<compile_context>
chip_gen: v7x
topology: tpu7x:2x2x1
jax: 0.10.0
libtpu: 0.0.40
codegen_flags: <defaults>
</compile_context>

<pallas_src>
import math
from functools import partial

import jax
import jax.numpy as jnp
from jax.experimental import pallas as pl
from jax.experimental.pallas import tpu as pltpu


def _stacked_lstm_kernel(x_ref, w_ref, b_ref, h_ref, c_ref, out_ref,
                         *, layers, hidden):
    """Single-invocation kernel: unrolled loop over the (sequential) layer stack.

    x_ref:   (1, H)        layer-0 input
    w_ref:   (L, 2H, 4H)   fused [W_ih^T ; W_hh^T] per layer (f32 or bf16)
    b_ref:   (L, 1, 4H)    fused b_ih + b_hh per layer (f32)
    h_ref:   (L, 1, H)     previous hidden states
    c_ref:   (L, 1, H)     previous cell states
    out_ref: (2L, H)       rows [0:L] = next_h, rows [L:2L] = next_c
    """
    out_dtype = out_ref.dtype
    x = x_ref[...].astype(jnp.float32)                 # (1, H)

    h_rows, c_rows = [], []
    for l in range(layers):                            # static -> fully unrolled
        h = h_ref[l].astype(jnp.float32)               # (1, H)
        c = c_ref[l].astype(jnp.float32)               # (1, H)

        w_l = w_ref[l]                                 # (2H, 4H)
        xh = jnp.concatenate([x, h], axis=1)           # (1, 2H) fused MXU operand

        # One MXU push per layer: (1, 2H) @ (2H, 4H) -> (1, 4H), f32 accumulate.
        gates = (jnp.dot(xh.astype(w_l.dtype), w_l,
                         preferred_element_type=jnp.float32)
                 + b_ref[l].astype(jnp.float32))       # (1, 4H)

        # Two full-width EUP passes, then slice (gate order i, f, g, o).
        sig = jax.nn.sigmoid(gates)
        tnh = jnp.tanh(gates)
        i_g = sig[:, 0 * hidden:1 * hidden]
        f_g = sig[:, 1 * hidden:2 * hidden]
        g_g = tnh[:, 2 * hidden:3 * hidden]
        o_g = sig[:, 3 * hidden:4 * hidden]

        c_new = f_g * c + i_g * g_g
        h_new = o_g * jnp.tanh(c_new)

        h_rows.append(h_new)
        c_rows.append(c_new)

        # inputs = curr_h[-1].view(1, -1) (batch == 1): feed the value the next
        # layer would actually see (round-trip through the I/O dtype).
        x = h_new.astype(out_dtype).astype(jnp.float32)

    # Single lane-stacked output slab, written once.
    out_ref[...] = jnp.concatenate(h_rows + c_rows, axis=0).astype(out_dtype)


def prepare_stacked_lstm_params(w_ih, w_hh, b_ih, b_hh, *,
                                param_dtype=jnp.float32):
    """Init-time parameter preprocessing (do NOT pay this per forward call).

    w_ih, w_hh: (L, 4H, H) PyTorch-layout weights
    b_ih, b_hh: (L, 4H)    biases
    Returns:
      w_fused: (L, 2H, 4H) = concat([w_ih^T, w_hh^T], axis=1), cast to param_dtype
      b_fused: (L, 1, 4H)  = b_ih + b_hh, kept in f32
    """
    L, four_h, _ = w_ih.shape
    w_fused = jnp.concatenate(
        [jnp.transpose(w_ih, (0, 2, 1)), jnp.transpose(w_hh, (0, 2, 1))],
        axis=1).astype(param_dtype)
    b_fused = (b_ih + b_hh).reshape(L, 1, four_h).astype(jnp.float32)
    return w_fused, b_fused


def stacked_lstm_cell(x, prev_h, prev_c, w_fused, b_fused):
    """Pallas forward of StackedLSTMCell.

    Args:
      x:       (1, H)        input to the first layer
      prev_h:  (L, 1, H)     stacked previous hidden states
      prev_c:  (L, 1, H)     stacked previous cell states
      w_fused: (L, 2H, 4H)   from prepare_stacked_lstm_params
      b_fused: (L, 1, 4H)    from prepare_stacked_lstm_params

    Returns:
      next_h, next_c: each (L, 1, H)
    """
    L, _, H = prev_h.shape

    kernel = partial(_stacked_lstm_kernel, layers=L, hidden=H)
    out_shape = jax.ShapeDtypeStruct((2 * L, H), x.dtype)

    grid_spec = pltpu.PrefetchScalarGridSpec(
        num_scalar_prefetch=0,
        grid=(1,),  # single step: all params/states VMEM-resident, loop inside
        in_specs=[
            pl.BlockSpec((1, H), lambda i: (0, 0)),                  # x
            pl.BlockSpec((L, 2 * H, 4 * H), lambda i: (0, 0, 0)),    # fused W
            pl.BlockSpec((L, 1, 4 * H), lambda i: (0, 0, 0)),        # fused b
            pl.BlockSpec((L, 1, H), lambda i: (0, 0, 0)),            # prev_h
            pl.BlockSpec((L, 1, H), lambda i: (0, 0, 0)),            # prev_c
        ],
        out_specs=pl.BlockSpec((2 * L, H), lambda i: (0, 0)),
    )

    out = pl.pallas_call(
        kernel,
        out_shape=out_shape,
        grid_spec=grid_spec,
        compiler_params=pltpu.CompilerParams(
            dimension_semantics=("arbitrary",)),   # layer chain is sequential
    )(x, w_fused, b_fused, prev_h, prev_c)

    next_h = out[:L].reshape(L, 1, H)
    next_c = out[L:].reshape(L, 1, H)
    return next_h, next_c


def _reference(x, prev_h, prev_c, w_ih, w_hh, b_ih, b_hh):
    """Pure-JAX replica of the PyTorch forward (for verification)."""
    L, _, H = prev_h.shape
    nh, nc = [], []
    inp = x
    for l in range(L):
        gates = (inp @ w_ih[l].T + b_ih[l] + prev_h[l] @ w_hh[l].T + b_hh[l])
        i_g, f_g, g_g, o_g = jnp.split(gates, 4, axis=-1)
        i_g = jax.nn.sigmoid(i_g)
        f_g = jax.nn.sigmoid(f_g)
        g_g = jnp.tanh(g_g)
        o_g = jax.nn.sigmoid(o_g)
        c_new = f_g * prev_c[l] + i_g * g_g
        h_new = o_g * jnp.tanh(c_new)
        nh.append(h_new)
        nc.append(c_new)
        inp = h_new[-1].reshape(1, -1)
    return jnp.stack(nh), jnp.stack(nc)


if __name__ == "__main__":
    LAYERS = 2
    HIDDEN = 32
    BATCH = 1          # ENAS uses batch 1; required for curr_h[-1].view(1,-1)

    key = jax.random.PRNGKey(0)
    ks = jax.random.split(key, 8)
    bound = 1.0 / math.sqrt(HIDDEN)   # PyTorch LSTMCell default init range

    x = jax.random.normal(ks[0], (BATCH, HIDDEN), dtype=jnp.float32)
    prev_h = jax.random.normal(ks[1], (LAYERS, BATCH, HIDDEN), dtype=jnp.float32)
    prev_c = jax.random.normal(ks[2], (LAYERS, BATCH, HIDDEN), dtype=jnp.float32)

    w_ih = jax.random.uniform(ks[3], (LAYERS, 4 * HIDDEN, HIDDEN),
                              minval=-bound, maxval=bound, dtype=jnp.float32)
    w_hh = jax.random.uniform(ks[4], (LAYERS, 4 * HIDDEN, HIDDEN),
                              minval=-bound, maxval=bound, dtype=jnp.float32)
    b_ih = jax.random.uniform(ks[5], (LAYERS, 4 * HIDDEN),
                              minval=-bound, maxval=bound, dtype=jnp.float32)
    b_hh = jax.random.uniform(ks[6], (LAYERS, 4 * HIDDEN),
                              minval=-bound, maxval=bound, dtype=jnp.float32)

    ref_h, ref_c = _reference(x, prev_h, prev_c, w_ih, w_hh, b_ih, b_hh)

    # f32-weight path (params fused/transposed once at init, not per call).
    w_f32, b_f32 = prepare_stacked_lstm_params(w_ih, w_hh, b_ih, b_hh,
                                               param_dtype=jnp.float32)
    next_h, next_c = stacked_lstm_cell(x, prev_h, prev_c, w_f32, b_f32)
    jax.block_until_ready((next_h, next_c))
    assert jnp.allclose(next_h, ref_h, atol=1e-5, rtol=1e-5)
    assert jnp.allclose(next_c, ref_c, atol=1e-5, rtol=1e-5)

    # bf16-weight path (halves weight HBM->VMEM traffic; f32 MXU accumulation).
    w_bf16, b_bf16 = prepare_stacked_lstm_params(w_ih, w_hh, b_ih, b_hh,
                                                 param_dtype=jnp.bfloat16)
    nh_bf, nc_bf = stacked_lstm_cell(x, prev_h, prev_c, w_bf16, b_bf16)
    jax.block_until_ready((nh_bf, nc_bf))
    assert jnp.allclose(nh_bf, ref_h, atol=5e-2, rtol=5e-2)
    assert jnp.allclose(nc_bf, ref_c, atol=5e-2, rtol=5e-2)

    # Module returns (list_of_h, list_of_c); expose the same structure.
    next_h_list = [next_h[i] for i in range(LAYERS)]
    next_c_list = [next_c[i] for i in range(LAYERS)]
    assert len(next_h_list) == LAYERS and next_h_list[0].shape == (BATCH, HIDDEN)

    print("KERNEL_OK")
</pallas_src>

<mosaic_0001>
module attributes {stable_mosaic.version = 11 : i64} {
  func.func @_stacked_lstm_kernel(%arg0: i32, %arg1: memref<1x32xf32, #tpu.memory_space<vmem>>, %arg2: memref<2x64x128xf32, #tpu.memory_space<vmem>>, %arg3: memref<2x1x128xf32, #tpu.memory_space<vmem>>, %arg4: memref<2x1x32xf32, #tpu.memory_space<vmem>>, %arg5: memref<2x1x32xf32, #tpu.memory_space<vmem>>, %arg6: memref<4x32xf32, #tpu.memory_space<vmem>>) attributes {dimension_semantics = [#tpu.dimension_semantics<arbitrary>], iteration_bounds = array<i64: 1>, scalar_prefetch = 0 : i64, scratch_operands = 0 : i64, tpu.core_type = #tpu.core_type<tc>, window_params = [{pipeline_mode = #tpu.pipeline_mode<synchronous>, transform_indices = @transform_0, window_bounds = array<i64: 1, 32>}, {pipeline_mode = #tpu.pipeline_mode<synchronous>, transform_indices = @transform_1, window_bounds = array<i64: 2, 64, 128>}, {pipeline_mode = #tpu.pipeline_mode<synchronous>, transform_indices = @transform_2, window_bounds = array<i64: 2, 1, 128>}, {pipeline_mode = #tpu.pipeline_mode<synchronous>, transform_indices = @transform_3, window_bounds = array<i64: 2, 1, 32>}, {pipeline_mode = #tpu.pipeline_mode<synchronous>, transform_indices = @transform_4, window_bounds = array<i64: 2, 1, 32>}, {pipeline_mode = #tpu.pipeline_mode<synchronous>, transform_indices = @transform_5, window_bounds = array<i64: 4, 32>}]} {
    %c0 = arith.constant 0 : index
    %c0_0 = arith.constant 0 : index
    %0 = vector.load %arg1[%c0, %c0_0] : memref<1x32xf32, #tpu.memory_space<vmem>>, vector<1x32xf32>
    %c0_1 = arith.constant 0 : index
    %c0_2 = arith.constant 0 : index
    %c0_3 = arith.constant 0 : index
    %1 = vector.load %arg4[%c0_1, %c0_2, %c0_3] : memref<2x1x32xf32, #tpu.memory_space<vmem>>, vector<1x1x32xf32>
    %2 = vector.shape_cast %1 : vector<1x1x32xf32> to vector<1x32xf32>
    %c0_4 = arith.constant 0 : index
    %c0_5 = arith.constant 0 : index
    %c0_6 = arith.constant 0 : index
    %3 = vector.load %arg5[%c0_4, %c0_5, %c0_6] : memref<2x1x32xf32, #tpu.memory_space<vmem>>, vector<1x1x32xf32>
    %4 = vector.shape_cast %3 : vector<1x1x32xf32> to vector<1x32xf32>
    %c0_7 = arith.constant 0 : index
    %c0_8 = arith.constant 0 : index
    %c0_9 = arith.constant 0 : index
    %5 = vector.load %arg2[%c0_7, %c0_8, %c0_9] : memref<2x64x128xf32, #tpu.memory_space<vmem>>, vector<1x64x128xf32>
    %6 = vector.shape_cast %5 : vector<1x64x128xf32> to vector<64x128xf32>
    %7 = tpu.concatenate %0, %2 in 1 : vector<1x32xf32>, vector<1x32xf32> -> vector<1x64xf32>
    %cst = arith.constant dense<0.000000e+00> : vector<1x128xf32>
    %8 = tpu.matmul %7, %6, %cst {dimension_numbers = #tpu.dot_dimension_numbers<[1], [0], [0], [1], [0, 0, 1, 1], [], []>} : vector<1x64xf32>, vector<64x128xf32>, vector<1x128xf32> -> vector<1x128xf32>
    %c0_10 = arith.constant 0 : index
    %c0_11 = arith.constant 0 : index
    %c0_12 = arith.constant 0 : index
    %9 = vector.load %arg3[%c0_10, %c0_11, %c0_12] : memref<2x1x128xf32, #tpu.memory_space<vmem>>, vector<1x1x128xf32>
    %10 = vector.shape_cast %9 : vector<1x1x128xf32> to vector<1x128xf32>
    %11 = arith.addf %8, %10 : vector<1x128xf32>
    %12 = arith.negf %11 : vector<1x128xf32>
    %13 = math.exp %12 : vector<1x128xf32>
    %cst_13 = arith.constant 1.000000e+00 : f32
    %14 = vector.broadcast %cst_13 : f32 to vector<1x128xf32>
    %15 = arith.addf %14, %13 : vector<1x128xf32>
    %16 = arith.divf %14, %15 : vector<1x128xf32>
    %17 = math.tanh %11 : vector<1x128xf32>
    %18 = vector.extract_strided_slice %16 {offsets = [0, 0], sizes = [1, 32], strides = [1, 1]} : vector<1x128xf32> to vector<1x32xf32>
    %19 = vector.extract_strided_slice %16 {offsets = [0, 32], sizes = [1, 32], strides = [1, 1]} : vector<1x128xf32> to vector<1x32xf32>
    %20 = vector.extract_strided_slice %17 {offsets = [0, 64], sizes = [1, 32], strides = [1, 1]} : vector<1x128xf32> to vector<1x32xf32>
    %21 = vector.extract_strided_slice %16 {offsets = [0, 96], sizes = [1, 32], strides = [1, 1]} : vector<1x128xf32> to vector<1x32xf32>
    %22 = arith.mulf %19, %4 : vector<1x32xf32>
    %23 = arith.mulf %18, %20 : vector<1x32xf32>
    %24 = arith.addf %22, %23 : vector<1x32xf32>
    %25 = math.tanh %24 : vector<1x32xf32>
    %26 = arith.mulf %21, %25 : vector<1x32xf32>
    %c1 = arith.constant 1 : index
    %c0_14 = arith.constant 0 : index
    %c0_15 = arith.constant 0 : index
    %27 = vector.load %arg4[%c1, %c0_14, %c0_15] : memref<2x1x32xf32, #tpu.memory_space<vmem>>, vector<1x1x32xf32>
    %28 = vector.shape_cast %27 : vector<1x1x32xf32> to vector<1x32xf32>
    %c1_16 = arith.constant 1 : index
    %c0_17 = arith.constant 0 : index
    %c0_18 = arith.constant 0 : index
    %29 = vector.load %arg5[%c1_16, %c0_17, %c0_18] : memref<2x1x32xf32, #tpu.memory_space<vmem>>, vector<1x1x32xf32>
    %30 = vector.shape_cast %29 : vector<1x1x32xf32> to vector<1x32xf32>
    %c1_19 = arith.constant 1 : index
    %c0_20 = arith.constant 0 : index
    %c0_21 = arith.constant 0 : index
    %31 = vector.load %arg2[%c1_19, %c0_20, %c0_21] : memref<2x64x128xf32, #tpu.memory_space<vmem>>, vector<1x64x128xf32>
    %32 = vector.shape_cast %31 : vector<1x64x128xf32> to vector<64x128xf32>
    %33 = tpu.concatenate %26, %28 in 1 : vector<1x32xf32>, vector<1x32xf32> -> vector<1x64xf32>
    %cst_22 = arith.constant dense<0.000000e+00> : vector<1x128xf32>
    %34 = tpu.matmul %33, %32, %cst_22 {dimension_numbers = #tpu.dot_dimension_numbers<[1], [0], [0], [1], [0, 0, 1, 1], [], []>} : vector<1x64xf32>, vector<64x128xf32>, vector<1x128xf32> -> vector<1x128xf32>
    %c1_23 = arith.constant 1 : index
    %c0_24 = arith.constant 0 : index
    %c0_25 = arith.constant 0 : index
    %35 = vector.load %arg3[%c1_23, %c0_24, %c0_25] : memref<2x1x128xf32, #tpu.memory_space<vmem>>, vector<1x1x128xf32>
    %36 = vector.shape_cast %35 : vector<1x1x128xf32> to vector<1x128xf32>
    %37 = arith.addf %34, %36 : vector<1x128xf32>
    %38 = arith.negf %37 : vector<1x128xf32>
    %39 = math.exp %38 : vector<1x128xf32>
    %cst_26 = arith.constant 1.000000e+00 : f32
    %40 = vector.broadcast %cst_26 : f32 to vector<1x128xf32>
    %41 = arith.addf %40, %39 : vector<1x128xf32>
    %42 = arith.divf %40, %41 : vector<1x128xf32>
    %43 = math.tanh %37 : vector<1x128xf32>
    %44 = vector.extract_strided_slice %42 {offsets = [0, 0], sizes = [1, 32], strides = [1, 1]} : vector<1x128xf32> to vector<1x32xf32>
    %45 = vector.extract_strided_slice %42 {offsets = [0, 32], sizes = [1, 32], strides = [1, 1]} : vector<1x128xf32> to vector<1x32xf32>
    %46 = vector.extract_strided_slice %43 {offsets = [0, 64], sizes = [1, 32], strides = [1, 1]} : vector<1x128xf32> to vector<1x32xf32>
    %47 = vector.extract_strided_slice %42 {offsets = [0, 96], sizes = [1, 32], strides = [1, 1]} : vector<1x128xf32> to vector<1x32xf32>
    %48 = arith.mulf %45, %30 : vector<1x32xf32>
    %49 = arith.mulf %44, %46 : vector<1x32xf32>
    %50 = arith.addf %48, %49 : vector<1x32xf32>
    %51 = math.tanh %50 : vector<1x32xf32>
    %52 = arith.mulf %47, %51 : vector<1x32xf32>
    %53 = tpu.concatenate %26, %52, %24, %50 in 0 : vector<1x32xf32>, vector<1x32xf32>, vector<1x32xf32>, vector<1x32xf32> -> vector<4x32xf32>
    %c0_27 = arith.constant 0 : index
    %c0_28 = arith.constant 0 : index
    %54 = vector.load %arg6[%c0_27, %c0_28] : memref<4x32xf32, #tpu.memory_space<vmem>>, vector<4x32xf32>
    tpu.vector_store %arg6[%c0_27, %c0_28], %53 {strides = array<i32>} : memref<4x32xf32, #tpu.memory_space<vmem>>, vector<4x32xf32>,
    return
  }
  func.func @transform_0(%arg0: i32) -> (i32, i32) {
    %c0_i32 = arith.constant 0 : i32
    %c0_i32_0 = arith.constant 0 : i32
    %c0_i32_1 = arith.constant 0 : i32
    return %c0_i32, %c0_i32_0 : i32, i32
  }
  func.func @transform_1(%arg0: i32) -> (i32, i32, i32) {
    %c0_i32 = arith.constant 0 : i32
    %c0_i32_0 = arith.constant 0 : i32
    %c0_i32_1 = arith.constant 0 : i32
    %c0_i32_2 = arith.constant 0 : i32
    return %c0_i32, %c0_i32_0, %c0_i32_1 : i32, i32, i32
  }
  func.func @transform_2(%arg0: i32) -> (i32, i32, i32) {
    %c0_i32 = arith.constant 0 : i32
    %c0_i32_0 = arith.constant 0 : i32
    %c0_i32_1 = arith.constant 0 : i32
    %c0_i32_2 = arith.constant 0 : i32
    return %c0_i32, %c0_i32_0, %c0_i32_1 : i32, i32, i32
  }
  func.func @transform_3(%arg0: i32) -> (i32, i32, i32) {
    %c0_i32 = arith.constant 0 : i32
    %c0_i32_0 = arith.constant 0 : i32
    %c0_i32_1 = arith.constant 0 : i32
    %c0_i32_2 = arith.constant 0 : i32
    return %c0_i32, %c0_i32_0, %c0_i32_1 : i32, i32, i32
  }
  func.func @transform_4(%arg0: i32) -> (i32, i32, i32) {
    %c0_i32 = arith.constant 0 : i32
    %c0_i32_0 = arith.constant 0 : i32
    %c0_i32_1 = arith.constant 0 : i32
    %c0_i32_2 = arith.constant 0 : i32
    return %c0_i32, %c0_i32_0, %c0_i32_1 : i32, i32, i32
  }
  func.func @transform_5(%arg0: i32) -> (i32, i32) {
    %c0_i32 = arith.constant 0 : i32
    %c0_i32_0 = arith.constant 0 : i32
    %c0_i32_1 = arith.constant 0 : i32
    return %c0_i32, %c0_i32_0 : i32, i32
  }
}

</mosaic_0001>

<bundles_post_ra>
// kernel: tpu_custom_call.1
= control target key start
LH: loop header
LB: loop body
LE: loop exit
PB: predicated region body
PF: predicated region fallthrough
CT: control target
= control target key end

     0   :  { %10 = vsyncpa [#allocation3], 0  ;;  %s665_s0 = inlined_call_operand.hbm [shape: f32[1,32], index: 0, kind: input, shape index: {}]   ;;  %s666_s1 = inlined_call_operand.hbm [shape: f32[2,64,128], index: 1, kind: input, shape index: {}]   ;;  %s667_s2 = inlined_call_operand.vmem [shape: f32[2,1,128], index: 2, kind: input, shape index: {}]   ;;  %s668_s3 = inlined_call_operand.vmem [shape: f32[2,1,32], index: 3, kind: input, shape index: {}]   ;;  %s669_s4 = inlined_call_operand.vmem [shape: f32[2,1,32], index: 4, kind: input, shape index: {}]   ;;  %s670_s5 = inlined_call_operand.hbm [shape: f32[4,32], index: 5, kind: output, shape index: {}]  }
   0x1   :  { %11 = vsyncpa [#allocation6], 0 }
   0x2   :  { %12 = vsyncpa [#allocation4], 0  ;;  %s538_s18 = smov [#allocation2]   ;;  %s539_s20 = smov [#allocation5]  }
   0x3   :  { %s19_s19 = sshll.u32 %s538_s18, 4  ;;  %s28_s21 = sshll.u32 %s539_s20, 4  ;;  %s20_s19 = int_to_ptr.vmem [resolvable:$true] %s19_s19  ;;  %s578_s21 = int_to_ptr.vmem [resolvable:$true] %s28_s21 }
   0x4   :  { %s466_s24 = scalar_lea.hbm %s665_s0, 16 }
   0x5   :  { %p467_p0 = scmp.ne.s32.totalorder %s665_s0, %s466_s24  ;;  %p470_p1 = scmp.lt.u32.totalorder %s466_s24, %s665_s0 }
   0x7   :  { %p472_p2 = pnand %p470_p1, %p467_p0 }
   0x9   :  { %475 = shalt.err (!%p472_p2)
}
   0xa   :  { %s476_s29 = scalar_lea.vmem %s20_s19, 16  ;;  %s480_s30 = scalar_lea.vmem %s20_s19, 32 }
   0xb   :  { %p477_p3 = scmp.ne.s32.totalorder %s20_s19, %s476_s29  ;;  %p481_p4 = scmp.lt.s32.totalorder %s20_s19, %s20_s19 }
   0xc   :  { %p482_p5 = scmp.lt.s32.totalorder %s480_s30, %s476_s29 }
   0xe   :  { %p483_p6 = por %p482_p5, %p481_p4 }
  0x10   :  { %p484_p7 = pnand %p483_p6, %p477_p3 }
  0x12   :  { %487 = shalt.err (!%p484_p7)
}
  0x13   :  { %22 = dma.hbm_to_vmem [thread:$0]  %s665_s0, 16, %s20_s19, [#allocation3]  }
  0x14   :  { %s488_s10 = scalar_lea.hbm %s666_s1, 2048 }
  0x15   :  { %p489_p8 = scmp.ne.s32.totalorder %s666_s1, %s488_s10  ;;  %p492_p9 = scmp.lt.u32.totalorder %s488_s10, %s666_s1 }
  0x17   :  { %p494_p10 = pnand %p492_p9, %p489_p8 }
  0x19   :  { %497 = shalt.err (!%p494_p10)
}
  0x1a   :  { %s498_s15 = scalar_lea.vmem %s578_s21, 2048  ;;  %p503_p12 = scmp.lt.s32.totalorder %s578_s21, %s578_s21 }
  0x1b   :  { %p499_p11 = scmp.ne.s32.totalorder %s578_s21, %s498_s15  ;;  %p504_p13 = scmp.lt.s32.totalorder %s498_s15, %s498_s15 }
  0x1d   :  { %p505_p0 = por %p504_p13, %p503_p12 }
  0x1f   :  { %p506_p1 = pnand %p505_p0, %p499_p11 }
  0x21   :  { %509 = shalt.err (!%p506_p1)
}
  0x22   :  { %s540_s0 = smov 128   ;;  %s541_s16 = smov 8  }
  0x23   :  { %34 = dma.hbm_to_vmem [thread:$0]  %s666_s1, 2048, %s578_s21, [#allocation6], %s540_s0, %s540_s0, %s541_s16  }
  0x24   :  { %532 = dma.done.wait [#allocation3], 16  }
  0x25   :  { %533 = vsyncadd [#allocation3], 4294967280 }
  0x26   :  { %534 = dma.done.wait [#allocation6], 2048  }
  0x27   :  { %535 = vsyncadd [#allocation6], 4294965248  ;;  %v542_v0 = vmov 0.0|0.0   ;;  %vm543_vm0 = vmmov 0   ;;  %v544_v1 = vmov 0.0   ;;  %v50_v3 = vld [vmem:[#allocation5] sm:$0xff] }
  0x28   :  { %416 = vmatprep.subr.bf16.mxu0 %v542_v0  ;;  %428 = vmatprep.subr.bf16.mxu1 %v542_v0  ;;  %v349_v2 = vld [vmem:[%s668_s3] ss:$0 sm:$0xff]  ;;  %v51_v4 = vld [vmem:[#allocation5 + $0x8] sm:$0xff]  ;;  %s545_s1 = smov 32   ;;  %v52_v6 = vld [vmem:[#allocation5 + $0x10] sm:$0xff]  ;;  %vm66_vm1 = vcmask 261120  }
  0x29   :  { %394 = vmatprep.mubr.msk.f32.mxu0 %vm543_vm0, %v544_v1  ;;  %413 = vmatprep.mubr.msk.f32.mxu1 %vm543_vm0, %v544_v1  ;;  %v417_v5 = vpack.c.bf16 %v51_v4, %v50_v3  ;;  %v53_v7 = vld [vmem:[#allocation5 + $0x18] sm:$0xff]  ;;  %v352_v9 = vld [vmem:[%s669_s4] ss:$0 sm:$0xff]  ;;  %v55_v11 = vld [vmem:[#allocation5 + $0x28] sm:$0xff]  ;;  %vm69_vm2 = vcmask 523264   ;;  %s546_s25 = smov 64  }
  0x2a   :  { %63 = vrot.lane.b32.xlu0 %v349_v2, %s545_s1  ;;  %v420_v8 = vpack.c.bf16 %v53_v7, %v52_v6  ;;  %v54_v10 = vld [vmem:[#allocation5 + $0x20] sm:$0xff]  ;;  %155 = vrot.lane.b32.xlu1 %v352_v9, %s545_s1  ;;  %v56_v13 = vld [vmem:[#allocation5 + $0x30] sm:$0xff]  ;;  %v57_v14 = vld [vmem:[#allocation5 + $0x38] sm:$0xff]  ;;  %vm321_vm3 = vcmask 1040384   ;;  %vm323_vm4 = vcmask 1041408   ;;  %vm325_vm5 = vcmask 1042432  }
  0x2b   :  { %418 = vmatpush3.bf16.msra.mxu0 %v417_v5  ;;  %v423_v12 = vpack.c.bf16 %v55_v11, %v54_v10  ;;  %v426_v15 = vpack.c.bf16 %v57_v14, %v56_v13  ;;  %v47_v16 = vld [vmem:[#allocation2] sm:$0x1]  ;;  %v68_v19 = vld [vmem:[%s667_s2] sm:$0x1]  ;;  %v181_v35 = vld [vmem:[#allocation5 + $0x48] sm:$0xff]  ;;  %vm331_vm6 = vcmask 257024  }
  0x2c   :  { %419 = vmatprep.subr.bf16.mxu0 %v542_v0  ;;  %v180_v34 = vld [vmem:[#allocation5 + $0x40] sm:$0xff]  ;;  %v182_v36 = vld [vmem:[#allocation5 + $0x50] sm:$0xff]  ;;  %v183_v38 = vld [vmem:[#allocation5 + $0x58] sm:$0xff] }
  0x2d   :  { %v429_v37 = vpack.c.bf16 %v181_v35, %v180_v34  ;;  %v432_v39 = vpack.c.bf16 %v183_v38, %v182_v36  ;;  %v184_v40 = vld [vmem:[#allocation5 + $0x60] sm:$0xff]  ;;  %v185_v41 = vld [vmem:[#allocation5 + $0x68] sm:$0xff]  ;;  %v186_v43 = vld [vmem:[#allocation5 + $0x70] sm:$0xff] }
  0x2e   :  { %v435_v42 = vpack.c.bf16 %v185_v41, %v184_v40  ;;  %v187_v44 = vld [vmem:[#allocation5 + $0x78] sm:$0xff]  ;;  %v355_v47 = vld [vmem:[%s668_s3 + $0x1] ss:$0 sm:$0xff] }
  0x2f   :  { %421 = vmatpush3.bf16.msra.mxu0 %v420_v8  ;;  %430 = vmatpush3.bf16.msra.mxu1 %v429_v37  ;;  %v438_v46 = vpack.c.bf16 %v187_v44, %v186_v43  ;;  %v359_v48 = vld [vmem:[%s669_s4 + $0x1] ss:$0 sm:$0xff] }
  0x30   :  { %422 = vmatprep.subr.bf16.mxu0 %v542_v0  ;;  %431 = vmatprep.subr.bf16.mxu1 %v542_v0  ;;  %v356_v54 = vld [vmem:[%s667_s2 + $0x1] sm:$0x1]  ;;  %s547_s2 = smov [#allocation7]  }
  0x31   :  { %s339_s4 = sshll.u32 %s547_s2, 4  ;;  %s340_s4 = int_to_ptr.vmem [resolvable:$true] %s339_s4 }
  0x32   :  { %s510_s6 = scalar_lea.vmem %s340_s4, 64  ;;  %p515_p3 = scmp.lt.s32.totalorder %s340_s4, %s340_s4 }
  0x33   :  { %424 = vmatpush3.bf16.msra.mxu0 %v423_v12  ;;  %433 = vmatpush3.bf16.msra.mxu1 %v432_v39  ;;  %p511_p2 = scmp.ne.s32.totalorder %s340_s4, %s510_s6  ;;  %p516_p4 = scmp.lt.s32.totalorder %s510_s6, %s510_s6 }
  0x34   :  { %425 = vmatprep.subr.bf16.mxu0 %v542_v0  ;;  %434 = vmatprep.subr.bf16.mxu1 %v542_v0 }
  0x35   :  { %p517_p5 = por %p516_p4, %p515_p3 }
  0x37   :  { %427 = vmatpush3.bf16.msra.mxu0 %v426_v15  ;;  %436 = vmatpush3.bf16.msra.mxu1 %v435_v42  ;;  %p518_p6 = pnand %p517_p5, %p511_p2 }
  0x38   :  { %437 = vmatprep.subr.bf16.mxu1 %v542_v0 }
  0x3b   :  { %439 = vmatpush3.bf16.msra.mxu1 %v438_v46 }
  0x9c   :  { %v64_v17 = vpop.permute.xlu0 %63  ;;  %v156_v30 = vpop.permute.xlu1 %155 }
  0x9d   :  { %v67_v18 = vsel %vm66_vm1, %v47_v16, %v64_v17 }
  0x9e   :  { %395 = vmatmul.mubr.msk.f32.vlgmr.msra.gmra.mrb[0].mxu0 %vm69_vm2, %v67_v18 }
 0x171   :  { %v139_v20 = vpop.f32.mrb[0].mxu0 }
 0x172   :  { %v140_v21 = vadd.f32 %v139_v20, %v68_v19  ;;  %v396_v22 = vpop.f32.mrb[1].mxu0 }
 0x174   :  { %450 = vtanh.f32 %v140_v21  ;;  %v351_v24 = vmul.f32 -1.442695, %v140_v21 }
 0x176   :  { %452 = vpow2.f32 %v351_v24 }
 0x17e   :  { %v451_v23 = vpop.eup %450 }
 0x17f   :  { %160 = vrot.lane.b32.xlu0 %v451_v23, %s546_s25 }
 0x180   :  { %v453_v25 = vpop.eup %452 }
 0x181   :  { %v146_v26 = vadd.f32 1.0, %v453_v25 }
 0x183   :  { %454 = vrcp.f32 %v146_v26 }
 0x18d   :  { %v455_v27 = vpop.eup %454 }
 0x18e   :  { %v158_v31 = vmul.f32 %v455_v27, %v156_v30 }
 0x1f1   :  { %v161_v28 = vpop.permute.xlu0 %160 }
 0x1f2   :  { %v163_v29 = vmul.f32 %v455_v27, %v161_v28 }
 0x1f4   :  { %165 = vrot.lane.b32.xlu1 %v163_v29, %s545_s1 }
 0x266   :  { %v166_v32 = vpop.permute.xlu1 %165 }
 0x267   :  { %v168_v33 = vadd.f32 %v166_v32, %v158_v31 }
 0x269   :  { %456 = vtanh.f32 %v168_v33  ;;  %v312_v1 = vrot.slane %v168_v33, 6 }
 0x273   :  { %v457_v45 = vpop.eup %456 }
 0x274   :  { %171 = vrot.lane.b32.xlu0 %v457_v45, %s546_s25 }
 0x278   :  { %197 = vrot.lane.b32.xlu0 %v355_v47, %s545_s1 }
 0x27c   :  { %288 = vrot.lane.b32.xlu0 %v359_v48, %s545_s1 }
 0x2e6   :  { %v172_v49 = vpop.permute.xlu0 %171 }
 0x2e7   :  { %v174_v50 = vmul.f32 %v455_v27, %v172_v49 }
 0x2e9   :  { %189 = vrot.lane.b32.xlu1 %v174_v50, %s545_s1 }
 0x2ea   :  { %v198_v51 = vpop.permute.xlu0 %197 }
 0x2ee   :  { %v289_v2 = vpop.permute.xlu0 %288 }
 0x35b   :  { %v190_v52 = vpop.permute.xlu1 %189 }
 0x35c   :  { %v200_v53 = vsel %vm66_vm1, %v190_v52, %v198_v51 }
 0x35d   :  { %414 = vmatmul.mubr.msk.f32.vlgmr.msra.gmra.mrb[0].mxu1 %vm69_vm2, %v200_v53 }
 0x430   :  { %v272_v55 = vpop.f32.mrb[0].mxu1 }
 0x431   :  { %v273_v56 = vadd.f32 %v356_v54, %v272_v55  ;;  %v415_v57 = vpop.f32.mrb[1].mxu1 }
 0x433   :  { %458 = vtanh.f32 %v273_v56  ;;  %v358_v59 = vmul.f32 -1.442695, %v273_v56 }
 0x435   :  { %460 = vpow2.f32 %v358_v59 }
 0x43d   :  { %v459_v58 = vpop.eup %458 }
 0x43e   :  { %293 = vrot.lane.b32.xlu1 %v459_v58, %s546_s25 }
 0x43f   :  { %v461_v60 = vpop.eup %460 }
 0x440   :  { %v279_v61 = vadd.f32 1.0, %v461_v60 }
 0x442   :  { %462 = vrcp.f32 %v279_v61 }
 0x44c   :  { %v463_v62 = vpop.eup %462 }
 0x44d   :  { %v291_v3 = vmul.f32 %v463_v62, %v289_v2 }
 0x4b0   :  { %v294_v63 = vpop.permute.xlu1 %293 }
 0x4b1   :  { %v296_v0 = vmul.f32 %v463_v62, %v294_v63 }
 0x4b3   :  { %298 = vrot.lane.b32.xlu1 %v296_v0, %s545_s1 }
 0x4b7   :  { %313 = vrot.lane.b32.xlu1 %v312_v1, %s546_s25 }
 0x525   :  { %v299_v4 = vpop.permute.xlu1 %298 }
 0x526   :  { %v301_v5 = vadd.f32 %v299_v4, %v291_v3 }
 0x528   :  { %464 = vtanh.f32 %v301_v5  ;;  %v317_v7 = vrot.slane %v301_v5, 5 }
 0x529   :  { %v314_v11 = vpop.permute.xlu1 %313 }
 0x532   :  { %v465_v6 = vpop.eup %464 }
 0x533   :  { %304 = vrot.lane.b32.xlu0 %v465_v6, %s546_s25 }
 0x537   :  { %318 = vrot.lane.b32.xlu0 %v317_v7, %s546_s25 }
 0x5a5   :  { %v305_v8 = vpop.permute.xlu0 %304 }
 0x5a6   :  { %v307_v9 = vmul.f32 %v463_v62, %v305_v8 }
 0x5a8   :  { %v309_v10 = vrot.slane %v307_v9, 7 }
 0x5a9   :  { %v319_v13 = vpop.permute.xlu0 %318 }
 0x5aa   :  { %v322_v12 = vsel %vm321_vm3, %v174_v50, %v309_v10 }
 0x5ab   :  { %v324_v14 = vsel %vm323_vm4, %v322_v12, %v314_v11 }
 0x5ac   :  { %v326_v15 = vsel %vm325_vm5, %v324_v14, %v319_v13 }
 0x5ad   :  { %328 = vrot.lane.b32.xlu1 %v326_v15, %s545_s1 }
 0x61f   :  { %v329_v16 = vpop.permute.xlu1 %328 }
 0x620   :  { %332 = vst.msk [vmem:[#allocation7] sm:$0xf] %vm331_vm6, %v329_v16 }
 0x621   :  { %521 = shalt.err (!%p518_p6)
}
 0x622   :  { %s522_s9 = scalar_lea.hbm %s670_s5, 64 }
 0x623   :  { %p523_p7 = scmp.ne.s32.totalorder %s670_s5, %s522_s9  ;;  %p526_p8 = scmp.lt.u32.totalorder %s522_s9, %s670_s5 }
 0x625   :  { %p528_p9 = pnand %p526_p8, %p523_p7 }
 0x627   :  { %531 = shalt.err (!%p528_p9)
}
 0x628   :  { %342 = dma.vmem_to_hbm [thread:$0]  %s340_s4, 64, %s670_s5, [#allocation4]  }
 0x629   :  { %536 = dma.done.wait [#allocation4], 64  }
 0x62a   :  { %537 = vsyncadd [#allocation4], 4294967232 }
 0x62b   :  { %346 = vsyncpa [#allocation3], 1 }
 0x62c   :  { %347 = vsyncpa [#allocation6], 1 }
 0x62d   :  { %348 = vsyncpa [#allocation4], 1 }

</bundles_post_ra>
